<compile_context>
chip_gen: v7x
topology: tpu7x:2x2x1
jax: 0.10.0
libtpu: 0.0.40
codegen_flags: <defaults>
</compile_context>

<pallas_src>
import jax
import jax.numpy as jnp
from jax.experimental import pallas as pl
from jax.experimental.pallas import tpu as pltpu

FEATS = 40 * 100      # 4000 (kept unpadded; full-array-dim block exception)
HIDDEN = 128
CLASSES = 2
OUT_PAD = 128         # lane-dense output width (padded classes)
BN_EPS = 1e-5
NEG_INF = -1e30       # bias for padded logit columns -> exp underflows to exactly 0


def _eeg_head_kernel(x_ref, w1_ref, b1_ref, w2_ref, b2_ref, out_ref):
    # x_ref : (TILE_B, 4000) f32   -- flattened encoder output, read directly from HBM
    # w1_ref: (4000, 128)    bf16  -- BN folded in
    # b1_ref: (1, 128)       f32   -- BN shift folded in
    # w2_ref: (128, 128)     bf16  -- columns 2..127 are zero
    # b2_ref: (1, 128)       f32   -- columns 2..127 are -1e30
    # out_ref: (TILE_B, 128) f32   -- padded softmax probabilities

    # in-kernel f32 -> bf16 cast (VPU work, hidden under the activation DMA)
    x_bf = x_ref[...].astype(jnp.bfloat16)

    # fc1 + bias + ReLU  (bf16 x bf16 MXU matmul, f32 accumulate)
    h = jnp.dot(x_bf, w1_ref[...], preferred_element_type=jnp.float32)
    h = jnp.maximum(h + b1_ref[...], 0.0)

    # Dropout(p=0.45) is identity in eval mode.

    # fc2 on the MXU in bf16 as well (padded columns stay exactly 0)
    logits = jnp.dot(h.astype(jnp.bfloat16), w2_ref[...],
                     preferred_element_type=jnp.float32) + b2_ref[...]

    # softmax over the padded 128-wide logits; padded columns contribute exp(...)=0
    m = jnp.max(logits, axis=1, keepdims=True)
    e = jnp.exp(logits - m)
    inv = pl.reciprocal(jnp.sum(e, axis=1, keepdims=True), approx=True)
    out_ref[...] = e * inv


def fold_params(params):
    """Fold eval-mode BatchNorm into fc1 and pre-pack weights (done once, offline)."""
    gamma, beta, rmean, rvar, w1, b1, w2, b2 = params

    scale = gamma * jax.lax.rsqrt(rvar + BN_EPS)          # (1, FEATS)
    shift = beta - rmean * scale                          # (1, FEATS)

    # fold BN into fc1 (f32 math), cast weight to bf16; no K padding needed
    w1_f = (scale.reshape(FEATS, 1) * w1).astype(jnp.bfloat16)   # (4000, 128)
    b1_f = (b1 + shift @ w1).astype(jnp.float32)                 # (1, 128)

    # lane-dense fc2: pad to 128 output columns, mask padded columns via -1e30 bias
    w2_p = jnp.pad(w2, ((0, 0), (0, OUT_PAD - CLASSES))).astype(jnp.bfloat16)
    b2_p = jnp.pad(b2, ((0, 0), (0, OUT_PAD - CLASSES)),
                   constant_values=NEG_INF).astype(jnp.float32)

    return (w1_f, b1_f, w2_p, b2_p)


def _pick_tile_b(B):
    """Batch tile: 16-aligned for tiny B; otherwise largest power of two <= 512
    that still yields >= 2 grid blocks (keeps both v7x TensorCores busy)."""
    if B <= 16:
        return 16
    tile = 512
    while tile > 16 and tile * 2 > B:
        tile //= 2
    return tile


@jax.jit
def eeg_cnn_7_e_head(x_enc, folded_params):
    """x_enc: (B, 40, 100) encoder output. Returns softmax probs (B, 2)."""
    w1_f, b1_f, w2_p, b2_p = folded_params
    B = x_enc.shape[0]

    # free reshape; NO K-padding / bf16 copy materialized in the wrapper
    x_flat = x_enc.reshape(B, FEATS).astype(jnp.float32)

    TILE_B = _pick_tile_b(B)
    n_blocks = pl.cdiv(B, TILE_B)
    Bp = n_blocks * TILE_B
    if Bp != B:
        x_flat = jnp.pad(x_flat, ((0, Bp - B), (0, 0)))

    cost = pl.CostEstimate(
        flops=2 * Bp * (FEATS * HIDDEN + HIDDEN * OUT_PAD),
        transcendentals=Bp * OUT_PAD,
        bytes_accessed=(Bp * FEATS * 4            # activation read (f32)
                        + FEATS * HIDDEN * 2      # w1 (bf16)
                        + HIDDEN * OUT_PAD * 2    # w2 (bf16)
                        + 2 * OUT_PAD * 4         # biases
                        + Bp * OUT_PAD * 4))      # output write

    out_padded = pl.pallas_call(
        _eeg_head_kernel,
        out_shape=jax.ShapeDtypeStruct((Bp, OUT_PAD), jnp.float32),
        grid_spec=pltpu.PrefetchScalarGridSpec(
            num_scalar_prefetch=0,
            grid=(n_blocks,),
            in_specs=[
                # activations: tiled over batch, K = full array dim (4000)
                pl.BlockSpec((TILE_B, FEATS), lambda i: (i, 0)),
                # weights/biases: index_map (0, 0) -> VMEM-resident across tiles
                pl.BlockSpec((FEATS, HIDDEN), lambda i: (0, 0)),
                pl.BlockSpec((1, HIDDEN), lambda i: (0, 0)),
                pl.BlockSpec((HIDDEN, OUT_PAD), lambda i: (0, 0)),
                pl.BlockSpec((1, OUT_PAD), lambda i: (0, 0)),
            ],
            out_specs=pl.BlockSpec((TILE_B, OUT_PAD), lambda i: (i, 0)),
        ),
        compiler_params=pltpu.CompilerParams(
            dimension_semantics=("parallel",),
            # f32 512x4000 activation tile = 8 MiB, x2 double-buffered:
            # exceeds v5e's 16 MiB scoped default, fits under 48 MiB everywhere
            # (v7x physical VMEM is 64 MiB).
            vmem_limit_bytes=48 << 20),
        cost_estimate=cost,
    )(x_flat, w1_f, b1_f, w2_p, b2_p)

    return out_padded[:B, :CLASSES]


def init_params(key):
    k1, k2, k3, k4 = jax.random.split(key, 4)

    # BatchNorm1d(4000): perturb away from defaults so the BN path is exercised.
    gamma = 1.0 + 0.1 * jax.random.normal(k1, (1, FEATS), jnp.float32)
    beta = 0.1 * jax.random.normal(k2, (1, FEATS), jnp.float32)
    rmean = 0.05 * jax.random.normal(k3, (1, FEATS), jnp.float32)
    rvar = jnp.ones((1, FEATS), jnp.float32) + 0.1 * jax.random.uniform(k4, (1, FEATS))

    # Linear layers (PyTorch default: U(-1/sqrt(fan_in), 1/sqrt(fan_in))), pre-transposed.
    kw1, kb1, kw2, kb2 = jax.random.split(jax.random.fold_in(key, 7), 4)
    lim1 = 1.0 / jnp.sqrt(FEATS)
    w1 = jax.random.uniform(kw1, (FEATS, HIDDEN), jnp.float32, -lim1, lim1)   # (in, out)
    b1 = jax.random.uniform(kb1, (1, HIDDEN), jnp.float32, -lim1, lim1)
    lim2 = 1.0 / jnp.sqrt(HIDDEN)
    w2 = jax.random.uniform(kw2, (HIDDEN, CLASSES), jnp.float32, -lim2, lim2)
    b2 = jax.random.uniform(kb2, (1, CLASSES), jnp.float32, -lim2, lim2)

    return (gamma, beta, rmean, rvar, w1, b1, w2, b2)


def reference(x_enc, params):
    """Plain-JAX f32 reference for the original (unfolded, unpadded) module."""
    gamma, beta, rmean, rvar, w1, b1, w2, b2 = params
    x = x_enc.reshape(x_enc.shape[0], FEATS).astype(jnp.float32)
    xn = (x - rmean) / jnp.sqrt(rvar + BN_EPS) * gamma + beta
    h = jnp.maximum(xn @ w1 + b1, 0.0)
    logits = h @ w2 + b2
    return jax.nn.softmax(logits, axis=1)


if __name__ == "__main__":
    key = jax.random.PRNGKey(0)
    kx, kp = jax.random.split(key)

    B = 8
    # Synthetic encoder output (stand-in for EEG_Encoder_E_3(2)(x[0])): (B, 40, 100)
    x_enc = jax.random.normal(kx, (B, 40, 100), jnp.float32)
    params = init_params(kp)
    folded = fold_params(params)          # one-time offline BN folding + packing

    out = eeg_cnn_7_e_head(x_enc, folded)
    out = jax.block_until_ready(out)

    ref = reference(x_enc, params)
    assert out.shape == (B, CLASSES)
    # approx reciprocal in the softmax -> row sums deviate from 1 at ~1e-3 level
    assert jnp.allclose(jnp.sum(out, axis=1), 1.0, atol=5e-3)
    # bf16 weights/activations with f32 accumulate: loosened tolerance vs. f32 reference
    assert jnp.allclose(out, ref, atol=2e-2, rtol=2e-2), float(jnp.max(jnp.abs(out - ref)))

    print("KERNEL_OK")
</pallas_src>

<mosaic_0001>
module attributes {stable_mosaic.version = 11 : i64} {
  func.func @_eeg_head_kernel(%arg0: i32, %arg1: memref<16x4000xf32, #tpu.memory_space<vmem>>, %arg2: memref<4000x128xbf16, #tpu.memory_space<vmem>>, %arg3: memref<1x128xf32, #tpu.memory_space<vmem>>, %arg4: memref<128x128xbf16, #tpu.memory_space<vmem>>, %arg5: memref<1x128xf32, #tpu.memory_space<vmem>>, %arg6: memref<16x128xf32, #tpu.memory_space<vmem>>) attributes {dimension_semantics = [#tpu.dimension_semantics<parallel>], iteration_bounds = array<i64: 1>, scalar_prefetch = 0 : i64, scratch_operands = 0 : i64, tpu.core_type = #tpu.core_type<tc>, window_params = [{transform_indices = @transform_0, window_bounds = array<i64: 16, 4000>}, {pipeline_mode = #tpu.pipeline_mode<synchronous>, transform_indices = @transform_1, window_bounds = array<i64: 4000, 128>}, {pipeline_mode = #tpu.pipeline_mode<synchronous>, transform_indices = @transform_2, window_bounds = array<i64: 1, 128>}, {pipeline_mode = #tpu.pipeline_mode<synchronous>, transform_indices = @transform_3, window_bounds = array<i64: 128, 128>}, {pipeline_mode = #tpu.pipeline_mode<synchronous>, transform_indices = @transform_4, window_bounds = array<i64: 1, 128>}, {transform_indices = @transform_5, window_bounds = array<i64: 16, 128>}]} {
    %c0 = arith.constant 0 : index
    %c0_0 = arith.constant 0 : index
    %0 = vector.load %arg1[%c0, %c0_0] : memref<16x4000xf32, #tpu.memory_space<vmem>>, vector<16x4000xf32>
    %1 = arith.truncf %0 : vector<16x4000xf32> to vector<16x4000xbf16>
    %c0_1 = arith.constant 0 : index
    %c0_2 = arith.constant 0 : index
    %2 = vector.load %arg2[%c0_1, %c0_2] : memref<4000x128xbf16, #tpu.memory_space<vmem>>, vector<4000x128xbf16>
    %cst = arith.constant dense<0.000000e+00> : vector<16x128xf32>
    %3 = tpu.matmul %1, %2, %cst {dimension_numbers = #tpu.dot_dimension_numbers<[1], [0], [0], [1], [0, 0, 1, 1], [], []>} : vector<16x4000xbf16>, vector<4000x128xbf16>, vector<16x128xf32> -> vector<16x128xf32>
    %c0_3 = arith.constant 0 : index
    %c0_4 = arith.constant 0 : index
    %4 = vector.load %arg3[%c0_3, %c0_4] : memref<1x128xf32, #tpu.memory_space<vmem>>, vector<1x128xf32>
    %5 = vector.broadcast %4 : vector<1x128xf32> to vector<16x128xf32>
    %6 = arith.addf %3, %5 : vector<16x128xf32>
    %cst_5 = arith.constant 0.000000e+00 : f32
    %7 = vector.broadcast %cst_5 : f32 to vector<16x128xf32>
    %8 = arith.maximumf %6, %7 : vector<16x128xf32>
    %9 = arith.truncf %8 : vector<16x128xf32> to vector<16x128xbf16>
    %c0_6 = arith.constant 0 : index
    %c0_7 = arith.constant 0 : index
    %10 = vector.load %arg4[%c0_6, %c0_7] : memref<128x128xbf16, #tpu.memory_space<vmem>>, vector<128x128xbf16>
    %cst_8 = arith.constant dense<0.000000e+00> : vector<16x128xf32>
    %11 = tpu.matmul %9, %10, %cst_8 {dimension_numbers = #tpu.dot_dimension_numbers<[1], [0], [0], [1], [0, 0, 1, 1], [], []>} : vector<16x128xbf16>, vector<128x128xbf16>, vector<16x128xf32> -> vector<16x128xf32>
    %c0_9 = arith.constant 0 : index
    %c0_10 = arith.constant 0 : index
    %12 = vector.load %arg5[%c0_9, %c0_10] : memref<1x128xf32, #tpu.memory_space<vmem>>, vector<1x128xf32>
    %13 = vector.broadcast %12 : vector<1x128xf32> to vector<16x128xf32>
    %14 = arith.addf %11, %13 : vector<16x128xf32>
    %cst_11 = arith.constant dense<0xFF800000> : vector<16xf32>
    %15 = vector.multi_reduction <maximumf>, %14, %cst_11 [1] : vector<16x128xf32> to vector<16xf32>
    %16 = vector.shape_cast %15 : vector<16xf32> to vector<16x1xf32>
    %17 = vector.broadcast %16 : vector<16x1xf32> to vector<16x128xf32>
    %18 = arith.subf %14, %17 : vector<16x128xf32>
    %19 = math.exp %18 : vector<16x128xf32>
    %cst_12 = arith.constant dense<0.000000e+00> : vector<16xf32>
    %20 = vector.multi_reduction <add>, %19, %cst_12 [1] : vector<16x128xf32> to vector<16xf32>
    %21 = vector.shape_cast %20 : vector<16xf32> to vector<16x1xf32>
    %22 = tpu.reciprocal %21 {approx = true} : vector<16x1xf32> -> vector<16x1xf32>
    %23 = vector.broadcast %22 : vector<16x1xf32> to vector<16x128xf32>
    %24 = arith.mulf %19, %23 : vector<16x128xf32>
    %c0_13 = arith.constant 0 : index
    %c0_14 = arith.constant 0 : index
    %25 = vector.load %arg6[%c0_13, %c0_14] : memref<16x128xf32, #tpu.memory_space<vmem>>, vector<16x128xf32>
    tpu.vector_store %arg6[%c0_13, %c0_14], %24 {strides = array<i32>} : memref<16x128xf32, #tpu.memory_space<vmem>>, vector<16x128xf32>,
    return
  }
  func.func @transform_0(%arg0: i32) -> (i32, i32) {
    %c0_i32 = arith.constant 0 : i32
    %c0_i32_0 = arith.constant 0 : i32
    return %arg0, %c0_i32 : i32, i32
  }
  func.func @transform_1(%arg0: i32) -> (i32, i32) {
    %c0_i32 = arith.constant 0 : i32
    %c0_i32_0 = arith.constant 0 : i32
    %c0_i32_1 = arith.constant 0 : i32
    return %c0_i32, %c0_i32_0 : i32, i32
  }
  func.func @transform_2(%arg0: i32) -> (i32, i32) {
    %c0_i32 = arith.constant 0 : i32
    %c0_i32_0 = arith.constant 0 : i32
    %c0_i32_1 = arith.constant 0 : i32
    return %c0_i32, %c0_i32_0 : i32, i32
  }
  func.func @transform_3(%arg0: i32) -> (i32, i32) {
    %c0_i32 = arith.constant 0 : i32
    %c0_i32_0 = arith.constant 0 : i32
    %c0_i32_1 = arith.constant 0 : i32
    return %c0_i32, %c0_i32_0 : i32, i32
  }
  func.func @transform_4(%arg0: i32) -> (i32, i32) {
    %c0_i32 = arith.constant 0 : i32
    %c0_i32_0 = arith.constant 0 : i32
    %c0_i32_1 = arith.constant 0 : i32
    return %c0_i32, %c0_i32_0 : i32, i32
  }
  func.func @transform_5(%arg0: i32) -> (i32, i32) {
    %c0_i32 = arith.constant 0 : i32
    %c0_i32_0 = arith.constant 0 : i32
    return %arg0, %c0_i32 : i32, i32
  }
}

</mosaic_0001>

<bundles_post_ra>
// kernel: eeg_cnn_7_e_head.1
= control target key start
LH: loop header
LB: loop body
LE: loop exit
PB: predicated region body
PF: predicated region fallthrough
CT: control target
= control target key end

     0   :  { %10 = vsyncpa [#allocation3], 0  ;;  %s3854_s18 = smov [#allocation2]   ;;  %s4140_s0 = inlined_call_operand.vmem [shape: f32[16,4000], index: 0, kind: input, shape index: {}]   ;;  %s4141_s1 = inlined_call_operand.hbm [shape: bf16[4000,128], index: 1, kind: input, shape index: {}]   ;;  %s4142_s2 = inlined_call_operand.vmem [shape: f32[1,128], index: 2, kind: input, shape index: {}]   ;;  %s4143_s3 = inlined_call_operand.vmem [shape: bf16[128,128], index: 3, kind: input, shape index: {}]   ;;  %s4144_s4 = inlined_call_operand.vmem [shape: f32[1,128], index: 4, kind: input, shape index: {}]   ;;  %s4145_s5 = inlined_call_operand.vmem [shape: f32[16,128], index: 5, kind: output, shape index: {}]  }
   0x1   :  { %s18_s19 = sshll.u32 %s3854_s18, 4  ;;  %s3830_s22 = scalar_lea.hbm %s4141_s1, 32000  ;;  %s19_s19 = int_to_ptr.vmem [resolvable:$true] %s18_s19 }
   0x2   :  { %p3831_p0 = scmp.ne.s32.totalorder %s4141_s1, %s3830_s22  ;;  %p3834_p1 = scmp.lt.u32.totalorder %s3830_s22, %s4141_s1 }
   0x4   :  { %p3836_p2 = pnand %p3834_p1, %p3831_p0 }
   0x6   :  { %3839 = shalt.err (!%p3836_p2)
}
   0x7   :  { %s3840_s27 = scalar_lea.vmem %s19_s19, 32000  ;;  %p3845_p4 = scmp.lt.s32.totalorder %s19_s19, %s19_s19 }
   0x8   :  { %p3841_p3 = scmp.ne.s32.totalorder %s19_s19, %s3840_s27  ;;  %p3846_p5 = scmp.lt.s32.totalorder %s3840_s27, %s3840_s27 }
   0xa   :  { %p3847_p6 = por %p3846_p5, %p3845_p4 }
   0xc   :  { %p3848_p7 = pnand %p3847_p6, %p3841_p3 }
   0xe   :  { %3851 = shalt.err (!%p3848_p7)
}
   0xf   :  { %s3855_s28 = smov 64   ;;  %s3856_s29 = smov 4  }
  0x10   :  { %24 = dma.hbm_to_vmem [thread:$0]  %s4141_s1, 32000, %s19_s19, [#allocation3], %s3855_s28, %s3855_s28, %s3856_s29  }
  0x11   :  { %3852 = dma.done.wait [#allocation3], 32000  }
  0x12   :  { %3853 = vsyncadd [#allocation3], 4294935296  ;;  %v3564_v0 = vld [vmem:[#allocation2 + $0x40] sm:$0xff]   ;;  %v3568_v4 = vld [vmem:[#allocation2 + $0x48] sm:$0xff]   ;;  %vm2138_vm0 = vcmask 261120   ;;  %vm3859_vm1 = vmmov 0  }
  0x13   :  { %v3565_v1 = vld [vmem:[#allocation2 + $0xc0] sm:$0xff]   ;;  %3199 = vmatprep.subr.bf16.mxu0 %v3564_v0  ;;  %v3569_v5 = vld [vmem:[#allocation2 + $0xc8] sm:$0xff]   ;;  %v3572_v8 = vld [vmem:[#allocation2 + $0x50] sm:$0xff]  }
  0x14   :  { %v3566_v2 = vld [vmem:[#allocation2] sm:$0xff]   ;;  %3221 = vmatprep.subr.bf16.mxu1 %v3565_v1  ;;  %v3570_v6 = vld [vmem:[#allocation2 + $0x8] sm:$0xff]   ;;  %v3573_v9 = vld [vmem:[#allocation2 + $0xd0] sm:$0xff]  }
  0x15   :  { %v3567_v3 = vld [vmem:[#allocation2 + $0x80] sm:$0xff]   ;;  %3200 = vmatpush3.bf16.msra.mxu0 %v3566_v2  ;;  %v3571_v7 = vld [vmem:[#allocation2 + $0x88] sm:$0xff]   ;;  %v3574_v10 = vld [vmem:[#allocation2 + $0x10] sm:$0xff]  }
  0x16   :  { %3222 = vmatpush3.bf16.msra.mxu1 %v3567_v3  ;;  %3201 = vmatprep.subr.bf16.mxu0 %v3568_v4  ;;  %v3575_v11 = vld [vmem:[#allocation2 + $0x90] sm:$0xff]   ;;  %v3576_v12 = vld [vmem:[#allocation2 + $0x58] sm:$0xff]   ;;  %v3580_v16 = vld [vmem:[#allocation2 + $0x60] sm:$0xff]  }
  0x17   :  { %3223 = vmatprep.subr.bf16.mxu1 %v3569_v5  ;;  %v3577_v13 = vld [vmem:[#allocation2 + $0xd8] sm:$0xff]   ;;  %v3581_v17 = vld [vmem:[#allocation2 + $0xe0] sm:$0xff]   ;;  %v3584_v20 = vld [vmem:[#allocation2 + $0x68] sm:$0xff]  }
  0x18   :  { %v3578_v14 = vld [vmem:[#allocation2 + $0x18] sm:$0xff]   ;;  %v3582_v18 = vld [vmem:[#allocation2 + $0x20] sm:$0xff]   ;;  %v3585_v21 = vld [vmem:[#allocation2 + $0xe8] sm:$0xff]  }
  0x19   :  { %3202 = vmatpush3.bf16.msra.mxu0 %v3570_v6  ;;  %v3579_v15 = vld [vmem:[#allocation2 + $0x98] sm:$0xff]   ;;  %v3583_v19 = vld [vmem:[#allocation2 + $0xa0] sm:$0xff]   ;;  %v3586_v22 = vld [vmem:[#allocation2 + $0x28] sm:$0xff]  }
  0x1a   :  { %3224 = vmatpush3.bf16.msra.mxu1 %v3571_v7  ;;  %3203 = vmatprep.subr.bf16.mxu0 %v3572_v8  ;;  %v3587_v23 = vld [vmem:[#allocation2 + $0xa8] sm:$0xff]   ;;  %v3588_v24 = vld [vmem:[#allocation2 + $0x70] sm:$0xff]   ;;  %v3592_v28 = vld [vmem:[#allocation2 + $0x78] sm:$0xff]  }
  0x1b   :  { %3225 = vmatprep.subr.bf16.mxu1 %v3573_v9  ;;  %v3589_v25 = vld [vmem:[#allocation2 + $0xf0] sm:$0xff]   ;;  %v3593_v29 = vld [vmem:[#allocation2 + $0xf8] sm:$0xff]   ;;  %v36_v32 = vld [vmem:[%s4140_s0 + $0x8] sm:$0xff] }
  0x1c   :  { %v3590_v26 = vld [vmem:[#allocation2 + $0x30] sm:$0xff]   ;;  %v3594_v30 = vld [vmem:[#allocation2 + $0x38] sm:$0xff]   ;;  %v68_v33 = vld [vmem:[%s4140_s0 + $0x108] sm:$0xff] }
  0x1d   :  { %3204 = vmatpush3.bf16.msra.mxu0 %v3574_v10  ;;  %v3591_v27 = vld [vmem:[#allocation2 + $0xb0] sm:$0xff]   ;;  %v3595_v31 = vld [vmem:[#allocation2 + $0xb8] sm:$0xff]   ;;  %v100_v35 = vpack.c.bf16 %v68_v33, %v36_v32  ;;  %v35_v37 = vld [vmem:[%s4140_s0] sm:$0xff] }
  0x1e   :  { %3226 = vmatpush3.bf16.msra.mxu1 %v3575_v11  ;;  %3205 = vmatprep.subr.bf16.mxu0 %v3576_v12  ;;  %v38_v34 = vld [vmem:[%s4140_s0 + $0x18] sm:$0xff]  ;;  %v67_v38 = vld [vmem:[%s4140_s0 + $0x100] sm:$0xff]  ;;  %v37_v41 = vld [vmem:[%s4140_s0 + $0x10] sm:$0xff] }
  0x1f   :  { %3227 = vmatprep.subr.bf16.mxu1 %v3577_v13  ;;  %v70_v36 = vld [vmem:[%s4140_s0 + $0x118] sm:$0xff]  ;;  %v99_v40 = vpack.c.bf16 %v67_v38, %v35_v37  ;;  %v69_v42 = vld [vmem:[%s4140_s0 + $0x110] sm:$0xff]  ;;  %2174 = vmatprep.mubr.bf16.mxu0 %v100_v35  ;;  %v3596_v44 = vld [vmem:[#allocation2 + $0x140] sm:$0xff]  }
  0x20   :  { %v102_v39 = vpack.c.bf16 %v70_v36, %v38_v34  ;;  %v101_v43 = vpack.c.bf16 %v69_v42, %v37_v41  ;;  %v3597_v45 = vld [vmem:[#allocation2 + $0x1c0] sm:$0xff]   ;;  %v3600_v48 = vld [vmem:[#allocation2 + $0x148] sm:$0xff]   ;;  %v3604_v52 = vld [vmem:[#allocation2 + $0x150] sm:$0xff]  }
  0x21   :  { %3206 = vmatpush3.bf16.msra.mxu0 %v3578_v14  ;;  %v3598_v46 = vld [vmem:[#allocation2 + $0x100] sm:$0xff]   ;;  %v3601_v49 = vld [vmem:[#allocation2 + $0x1c8] sm:$0xff]   ;;  %v3605_v53 = vld [vmem:[#allocation2 + $0x1d0] sm:$0xff]  }
  0x22   :  { %3228 = vmatpush3.bf16.msra.mxu1 %v3579_v15  ;;  %3207 = vmatprep.subr.bf16.mxu0 %v3580_v16  ;;  %v3599_v47 = vld [vmem:[#allocation2 + $0x180] sm:$0xff]   ;;  %v3602_v50 = vld [vmem:[#allocation2 + $0x108] sm:$0xff]   ;;  %v3606_v54 = vld [vmem:[#allocation2 + $0x110] sm:$0xff]  }
  0x23   :  { %3229 = vmatprep.subr.bf16.mxu1 %v3581_v17  ;;  %2215 = vmatprep.mubr.bf16.mxu1 %v102_v39  ;;  %v3603_v51 = vld [vmem:[#allocation2 + $0x188] sm:$0xff]   ;;  %v3607_v55 = vld [vmem:[#allocation2 + $0x190] sm:$0xff]   ;;  %v3608_v56 = vld [vmem:[#allocation2 + $0x158] sm:$0xff]  }
  0x24   :  { %v3609_v57 = vld [vmem:[#allocation2 + $0x1d8] sm:$0xff]   ;;  %v3612_v60 = vld [vmem:[#allocation2 + $0x160] sm:$0xff]   ;;  %v3616_v0 = vld [vmem:[#allocation2 + $0x168] sm:$0xff]  }
  0x25   :  { %3208 = vmatpush3.bf16.msra.mxu0 %v3582_v18  ;;  %v3610_v58 = vld [vmem:[#allocation2 + $0x118] sm:$0xff]   ;;  %v3613_v61 = vld [vmem:[#allocation2 + $0x1e0] sm:$0xff]   ;;  %v3617_v1 = vld [vmem:[#allocation2 + $0x1e8] sm:$0xff]  }
  0x26   :  { %3230 = vmatpush3.bf16.msra.mxu1 %v3583_v19  ;;  %3209 = vmatprep.subr.bf16.mxu0 %v3584_v20  ;;  %v3611_v59 = vld [vmem:[#allocation2 + $0x198] sm:$0xff]   ;;  %v3614_v62 = vld [vmem:[#allocation2 + $0x120] sm:$0xff]   ;;  %v3618_v2 = vld [vmem:[#allocation2 + $0x128] sm:$0xff]  }
  0x27   :  { %3231 = vmatprep.subr.bf16.mxu1 %v3585_v21  ;;  %v3615_v63 = vld [vmem:[#allocation2 + $0x1a0] sm:$0xff]   ;;  %v3619_v3 = vld [vmem:[#allocation2 + $0x1a8] sm:$0xff]   ;;  %v3620_v4 = vld [vmem:[#allocation2 + $0x170] sm:$0xff]  }
  0x28   :  { %v3621_v5 = vld [vmem:[#allocation2 + $0x1f0] sm:$0xff]   ;;  %v3624_v8 = vld [vmem:[#allocation2 + $0x178] sm:$0xff]   ;;  %v40_v12 = vld [vmem:[%s4140_s0 + $0x28] sm:$0xff] }
  0x29   :  { %3210 = vmatpush3.bf16.msra.mxu0 %v3586_v22  ;;  %v3622_v6 = vld [vmem:[#allocation2 + $0x130] sm:$0xff]   ;;  %v3625_v9 = vld [vmem:[#allocation2 + $0x1f8] sm:$0xff]   ;;  %v72_v13 = vld [vmem:[%s4140_s0 + $0x128] sm:$0xff] }
  0x2a   :  { %3232 = vmatpush3.bf16.msra.mxu1 %v3587_v23  ;;  %3211 = vmatprep.subr.bf16.mxu0 %v3588_v24  ;;  %v3623_v7 = vld [vmem:[#allocation2 + $0x1b0] sm:$0xff]   ;;  %v3626_v10 = vld [vmem:[#allocation2 + $0x138] sm:$0xff]   ;;  %v104_v16 = vpack.c.bf16 %v72_v13, %v40_v12  ;;  %v39_v18 = vld [vmem:[%s4140_s0 + $0x20] sm:$0xff] }
  0x2b   :  { %3233 = vmatprep.subr.bf16.mxu1 %v3589_v25  ;;  %v3627_v11 = vld [vmem:[#allocation2 + $0x1b8] sm:$0xff]   ;;  %v71_v19 = vld [vmem:[%s4140_s0 + $0x120] sm:$0xff]  ;;  %v41_v20 = vld [vmem:[%s4140_s0 + $0x30] sm:$0xff] }
  0x2c   :  { %v42_v14 = vld [vmem:[%s4140_s0 + $0x38] sm:$0xff]  ;;  %v103_v21 = vpack.c.bf16 %v71_v19, %v39_v18  ;;  %v73_v22 = vld [vmem:[%s4140_s0 + $0x130] sm:$0xff]  ;;  %v3628_v24 = vld [vmem:[#allocation2 + $0x240] sm:$0xff]  }
  0x2d   :  { %3212 = vmatpush3.bf16.msra.mxu0 %v3590_v26  ;;  %v74_v15 = vld [vmem:[%s4140_s0 + $0x138] sm:$0xff]  ;;  %v105_v23 = vpack.c.bf16 %v73_v22, %v41_v20  ;;  %v3629_v25 = vld [vmem:[#allocation2 + $0x2c0] sm:$0xff]   ;;  %v3636_v32 = vld [vmem:[#allocation2 + $0x250] sm:$0xff]  }
  0x2e   :  { %3234 = vmatpush3.bf16.msra.mxu1 %v3591_v27  ;;  %3213 = vmatprep.subr.bf16.mxu0 %v3592_v28  ;;  %v106_v17 = vpack.c.bf16 %v74_v15, %v42_v14  ;;  %v3630_v26 = vld [vmem:[#allocation2 + $0x200] sm:$0xff]   ;;  %v3632_v28 = vld [vmem:[#allocation2 + $0x248] sm:$0xff]   ;;  %v3637_v33 = vld [vmem:[#allocation2 + $0x2d0] sm:$0xff]  }
  0x2f   :  { %3235 = vmatprep.subr.bf16.mxu1 %v3593_v29  ;;  %v3631_v27 = vld [vmem:[#allocation2 + $0x280] sm:$0xff]   ;;  %v3633_v29 = vld [vmem:[#allocation2 + $0x2c8] sm:$0xff]   ;;  %v3638_v34 = vld [vmem:[#allocation2 + $0x210] sm:$0xff]  }
  0x30   :  { %v3639_v35 = vld [vmem:[#allocation2 + $0x290] sm:$0xff]   ;;  %v3640_v36 = vld [vmem:[#allocation2 + $0x258] sm:$0xff]   ;;  %v3645_v41 = vld [vmem:[#allocation2 + $0x2e0] sm:$0xff]  }
  0x31   :  { %3214 = vmatpush3.bf16.msra.mxu0 %v3594_v30  ;;  %v3634_v30 = vld [vmem:[#allocation2 + $0x208] sm:$0xff]   ;;  %v3641_v37 = vld [vmem:[#allocation2 + $0x2d8] sm:$0xff]   ;;  %v3646_v42 = vld [vmem:[#allocation2 + $0x220] sm:$0xff]  }
  0x32   :  { %3236 = vmatpush3.bf16.msra.mxu1 %v3595_v31  ;;  %3243 = vmatprep.subr.bf16.mxu0 %v3596_v44  ;;  %v3635_v31 = vld [vmem:[#allocation2 + $0x288] sm:$0xff]   ;;  %v3642_v38 = vld [vmem:[#allocation2 + $0x218] sm:$0xff]   ;;  %v3668_v12 = vld [vmem:[#allocation2 + $0x350] sm:$0xff]  }
  0x33   :  { %3265 = vmatprep.subr.bf16.mxu1 %v3597_v45  ;;  %v3643_v39 = vld [vmem:[#allocation2 + $0x298] sm:$0xff]   ;;  %v3648_v44 = vld [vmem:[#allocation2 + $0x268] sm:$0xff]   ;;  %v3669_v13 = vld [vmem:[#allocation2 + $0x3d0] sm:$0xff]  }
  0x34   :  { %2175 = vmatmul.mubr.bf16.vlgmr.msra.gmra.mrb[0].mxu0 %v99_v40  ;;  %v3644_v40 = vld [vmem:[#allocation2 + $0x260] sm:$0xff]   ;;  %v3649_v45 = vld [vmem:[#allocation2 + $0x2e8] sm:$0xff]   ;;  %v3670_v14 = vld [vmem:[#allocation2 + $0x310] sm:$0xff]  }
  0x35   :  { %2216 = vmatmul.mubr.bf16.vlgmr.msra.gmra.mrb[0].mxu1 %v101_v43  ;;  %3244 = vmatpush3.bf16.msra.mxu0 %v3598_v46  ;;  %v3647_v43 = vld [vmem:[#allocation2 + $0x2a0] sm:$0xff]   ;;  %v3650_v46 = vld [vmem:[#allocation2 + $0x228] sm:$0xff]   ;;  %v3671_v15 = vld [vmem:[#allocation2 + $0x390] sm:$0xff]  }
  0x36   :  { %3266 = vmatpush3.bf16.msra.mxu1 %v3599_v47  ;;  %3245 = vmatprep.subr.bf16.mxu0 %v3600_v48  ;;  %v3651_v47 = vld [vmem:[#allocation2 + $0x2a8] sm:$0xff]   ;;  %v3652_v48 = vld [vmem:[#allocation2 + $0x270] sm:$0xff]   ;;  %v3674_v18 = vld [vmem:[#allocation2 + $0x318] sm:$0xff]  }
  0x37   :  { %3267 = vmatprep.subr.bf16.mxu1 %v3601_v49  ;;  %2256 = vmatprep.mubr.bf16.mxu0 %v104_v16  ;;  %v3653_v49 = vld [vmem:[#allocation2 + $0x2f0] sm:$0xff]   ;;  %v3672_v16 = vld [vmem:[#allocation2 + $0x358] sm:$0xff]   ;;  %v3676_v20 = vld [vmem:[#allocation2 + $0x360] sm:$0xff]  }
  0x38   :  { %2297 = vmatprep.mubr.bf16.mxu1 %v106_v17  ;;  %v3673_v17 = vld [vmem:[#allocation2 + $0x3d8] sm:$0xff]   ;;  %v3678_v22 = vld [vmem:[#allocation2 + $0x320] sm:$0xff]  }
  0x39   :  { %3246 = vmatpush3.bf16.msra.mxu0 %v3602_v50  ;;  %v3654_v50 = vld [vmem:[#allocation2 + $0x230] sm:$0xff]   ;;  %v3675_v19 = vld [vmem:[#allocation2 + $0x398] sm:$0xff]  }
  0x3a   :  { %3268 = vmatpush3.bf16.msra.mxu1 %v3603_v51  ;;  %3247 = vmatprep.subr.bf16.mxu0 %v3604_v52  ;;  %v3655_v51 = vld [vmem:[#allocation2 + $0x2b0] sm:$0xff]   ;;  %v3656_v52 = vld [vmem:[#allocation2 + $0x278] sm:$0xff]  }
  0x3b   :  { %3269 = vmatprep.subr.bf16.mxu1 %v3605_v53  ;;  %v3657_v53 = vld [vmem:[#allocation2 + $0x2f8] sm:$0xff]  }
  0x3d   :  { %3248 = vmatpush3.bf16.msra.mxu0 %v3606_v54  ;;  %v3658_v54 = vld [vmem:[#allocation2 + $0x238] sm:$0xff]  }
  0x3e   :  { %3270 = vmatpush3.bf16.msra.mxu1 %v3607_v55  ;;  %3249 = vmatprep.subr.bf16.mxu0 %v3608_v56  ;;  %v3659_v55 = vld [vmem:[#allocation2 + $0x2b8] sm:$0xff]   ;;  %v44_v56 = vld [vmem:[%s4140_s0 + $0x48] sm:$0xff] }
  0x3f   :  { %3271 = vmatprep.subr.bf16.mxu1 %v3609_v57  ;;  %v76_v57 = vld [vmem:[%s4140_s0 + $0x148] sm:$0xff] }
  0x41   :  { %3250 = vmatpush3.bf16.msra.mxu0 %v3610_v58  ;;  %v108_v58 = vpack.c.bf16 %v76_v57, %v44_v56  ;;  %v3700_v56 = vld [vmem:[#allocation2 + $0x450] sm:$0xff]  }
  0x42   :  { %3272 = vmatpush3.bf16.msra.mxu1 %v3611_v59  ;;  %3251 = vmatprep.subr.bf16.mxu0 %v3612_v60  ;;  %v46_v59 = vld [vmem:[%s4140_s0 + $0x58] sm:$0xff]  ;;  %v3701_v57 = vld [vmem:[#allocation2 + $0x4d0] sm:$0xff]  }
  0x43   :  { %3273 = vmatprep.subr.bf16.mxu1 %v3613_v61  ;;  %v78_v60 = vld [vmem:[%s4140_s0 + $0x158] sm:$0xff]  ;;  %v43_v61 = vld [vmem:[%s4140_s0 + $0x40] sm:$0xff] }
  0x45   :  { %3252 = vmatpush3.bf16.msra.mxu0 %v3614_v62  ;;  %v110_v62 = vpack.c.bf16 %v78_v60, %v46_v59  ;;  %v3703_v59 = vld [vmem:[#allocation2 + $0x490] sm:$0xff]   ;;  %v3704_v60 = vld [vmem:[#allocation2 + $0x458] sm:$0xff]  }
  0x46   :  { %3274 = vmatpush3.bf16.msra.mxu1 %v3615_v63  ;;  %3253 = vmatprep.subr.bf16.mxu0 %v3616_v0  ;;  %v75_v63 = vld [vmem:[%s4140_s0 + $0x140] sm:$0xff]  ;;  %v45_v0 = vld [vmem:[%s4140_s0 + $0x50] sm:$0xff] }
  0x47   :  { %3275 = vmatprep.subr.bf16.mxu1 %v3617_v1  ;;  %v77_v1 = vld [vmem:[%s4140_s0 + $0x150] sm:$0xff] }
  0x49   :  { %3254 = vmatpush3.bf16.msra.mxu0 %v3618_v2  ;;  %v107_v2 = vpack.c.bf16 %v75_v63, %v43_v61  ;;  %v3705_v61 = vld [vmem:[#allocation2 + $0x4d8] sm:$0xff]  }
  0x4a   :  { %3276 = vmatpush3.bf16.msra.mxu1 %v3619_v3  ;;  %3255 = vmatprep.subr.bf16.mxu0 %v3620_v4  ;;  %v109_v3 = vpack.c.bf16 %v77_v1, %v45_v0  ;;  %v3660_v4 = vld [vmem:[#allocation2 + $0x340] sm:$0xff]   ;;  %v3707_v63 = vld [vmem:[#allocation2 + $0x498] sm:$0xff]  }
  0x4b   :  { %3277 = vmatprep.subr.bf16.mxu1 %v3621_v5  ;;  %v3661_v5 = vld [vmem:[#allocation2 + $0x3c0] sm:$0xff]  }
  0x4c   :  { %v3708_v0 = vld [vmem:[#allocation2 + $0x460] sm:$0xff]  }
  0x4d   :  { %3256 = vmatpush3.bf16.msra.mxu0 %v3622_v6  ;;  %v3662_v6 = vld [vmem:[#allocation2 + $0x300] sm:$0xff]  }
  0x4e   :  { %3278 = vmatpush3.bf16.msra.mxu1 %v3623_v7  ;;  %3257 = vmatprep.subr.bf16.mxu0 %v3624_v8  ;;  %v3663_v7 = vld [vmem:[#allocation2 + $0x380] sm:$0xff]   ;;  %v3664_v8 = vld [vmem:[#allocation2 + $0x348] sm:$0xff]  }
  0x4f   :  { %3279 = vmatprep.subr.bf16.mxu1 %v3625_v9  ;;  %v3665_v9 = vld [vmem:[#allocation2 + $0x3c8] sm:$0xff]   ;;  %v3709_v1 = vld [vmem:[#allocation2 + $0x4e0] sm:$0xff]  }
  0x51   :  { %3258 = vmatpush3.bf16.msra.mxu0 %v3626_v10  ;;  %v3666_v10 = vld [vmem:[#allocation2 + $0x308] sm:$0xff]  }
  0x52   :  { %3280 = vmatpush3.bf16.msra.mxu1 %v3627_v11  ;;  %3287 = vmatprep.subr.bf16.mxu0 %v3628_v24  ;;  %v3667_v11 = vld [vmem:[#allocation2 + $0x388] sm:$0xff]  }
  0x53   :  { %3309 = vmatprep.subr.bf16.mxu1 %v3629_v25  ;;  %v3680_v24 = vld [vmem:[#allocation2 + $0x368] sm:$0xff]  }
  0x54   :  { %2257 = vmatmul.mubr.bf16.vlgmr.msra.gmra.mrb[4].mxu0 %v103_v21  ;;  %v3677_v21 = vld [vmem:[#allocation2 + $0x3e0] sm:$0xff]   ;;  %v3681_v25 = vld [vmem:[#allocation2 + $0x3e8] sm:$0xff]  }
  0x55   :  { %2298 = vmatmul.mubr.bf16.vlgmr.msra.gmra.mrb[4].mxu1 %v105_v23  ;;  %3288 = vmatpush3.bf16.msra.mxu0 %v3630_v26  ;;  %v3679_v23 = vld [vmem:[#allocation2 + $0x3a0] sm:$0xff]   ;;  %v3682_v26 = vld [vmem:[#allocation2 + $0x328] sm:$0xff]  }
  0x56   :  { %3310 = vmatpush3.bf16.msra.mxu1 %v3631_v27  ;;  %3289 = vmatprep.subr.bf16.mxu0 %v3632_v28  ;;  %v3683_v27 = vld [vmem:[#allocation2 + $0x3a8] sm:$0xff]   ;;  %v3684_v28 = vld [vmem:[#allocation2 + $0x370] sm:$0xff]  }
  0x57   :  { %3311 = vmatprep.subr.bf16.mxu1 %v3633_v29  ;;  %2338 = vmatprep.mubr.bf16.mxu0 %v108_v58  ;;  %v3685_v29 = vld [vmem:[#allocation2 + $0x3f0] sm:$0xff]  }
  0x58   :  { %2379 = vmatprep.mubr.bf16.mxu1 %v110_v62  ;;  %v3702_v58 = vld [vmem:[#allocation2 + $0x410] sm:$0xff]   ;;  %v3706_v62 = vld [vmem:[#allocation2 + $0x418] sm:$0xff]  }
  0x59   :  { %3290 = vmatpush3.bf16.msra.mxu0 %v3634_v30  ;;  %v3686_v30 = vld [vmem:[#allocation2 + $0x330] sm:$0xff]  }
  0x5a   :  { %3312 = vmatpush3.bf16.msra.mxu1 %v3635_v31  ;;  %3291 = vmatprep.subr.bf16.mxu0 %v3636_v32  ;;  %v3687_v31 = vld [vmem:[#allocation2 + $0x3b0] sm:$0xff]   ;;  %v3688_v32 = vld [vmem:[#allocation2 + $0x378] sm:$0xff]  }
  0x5b   :  { %3313 = vmatprep.subr.bf16.mxu1 %v3637_v33  ;;  %v3689_v33 = vld [vmem:[#allocation2 + $0x3f8] sm:$0xff]  }
  0x5d   :  { %3292 = vmatpush3.bf16.msra.mxu0 %v3638_v34  ;;  %v3690_v34 = vld [vmem:[#allocation2 + $0x338] sm:$0xff]  }
  0x5e   :  { %3314 = vmatpush3.bf16.msra.mxu1 %v3639_v35  ;;  %3293 = vmatprep.subr.bf16.mxu0 %v3640_v36  ;;  %v3691_v35 = vld [vmem:[#allocation2 + $0x3b8] sm:$0xff]   ;;  %v48_v36 = vld [vmem:[%s4140_s0 + $0x68] sm:$0xff] }
  0x5f   :  { %3315 = vmatprep.subr.bf16.mxu1 %v3641_v37  ;;  %v80_v37 = vld [vmem:[%s4140_s0 + $0x168] sm:$0xff] }
  0x61   :  { %3294 = vmatpush3.bf16.msra.mxu0 %v3642_v38  ;;  %v50_v38 = vld [vmem:[%s4140_s0 + $0x78] sm:$0xff] }
  0x62   :  { %3316 = vmatpush3.bf16.msra.mxu1 %v3643_v39  ;;  %3295 = vmatprep.subr.bf16.mxu0 %v3644_v40  ;;  %v112_v39 = vpack.c.bf16 %v80_v37, %v48_v36  ;;  %v82_v40 = vld [vmem:[%s4140_s0 + $0x178] sm:$0xff]  ;;  %v3732_v36 = vld [vmem:[#allocation2 + $0x550] sm:$0xff]  }
  0x63   :  { %3317 = vmatprep.subr.bf16.mxu1 %v3645_v41  ;;  %v47_v41 = vld [vmem:[%s4140_s0 + $0x60] sm:$0xff]  ;;  %v3733_v37 = vld [vmem:[#allocation2 + $0x5d0] sm:$0xff]  }
  0x65   :  { %3296 = vmatpush3.bf16.msra.mxu0 %v3646_v42  ;;  %v79_v42 = vld [vmem:[%s4140_s0 + $0x160] sm:$0xff] }
  0x66   :  { %3318 = vmatpush3.bf16.msra.mxu1 %v3647_v43  ;;  %3297 = vmatprep.subr.bf16.mxu0 %v3648_v44  ;;  %v114_v43 = vpack.c.bf16 %v82_v40, %v50_v38  ;;  %v111_v44 = vpack.c.bf16 %v79_v42, %v47_v41  ;;  %v3734_v38 = vld [vmem:[#allocation2 + $0x510] sm:$0xff]   ;;  %v3736_v40 = vld [vmem:[#allocation2 + $0x558] sm:$0xff]  }
  0x67   :  { %3319 = vmatprep.subr.bf16.mxu1 %v3649_v45  ;;  %v49_v45 = vld [vmem:[%s4140_s0 + $0x70] sm:$0xff]  ;;  %v3737_v41 = vld [vmem:[#allocation2 + $0x5d8] sm:$0xff]  }
  0x68   :  { %v3738_v42 = vld [vmem:[#allocation2 + $0x518] sm:$0xff]  }
  0x69   :  { %3298 = vmatpush3.bf16.msra.mxu0 %v3650_v46  ;;  %v81_v46 = vld [vmem:[%s4140_s0 + $0x170] sm:$0xff] }
  0x6a   :  { %3320 = vmatpush3.bf16.msra.mxu1 %v3651_v47  ;;  %3299 = vmatprep.subr.bf16.mxu0 %v3652_v48  ;;  %v113_v47 = vpack.c.bf16 %v81_v46, %v49_v45  ;;  %v3692_v48 = vld [vmem:[#allocation2 + $0x440] sm:$0xff]  }
  0x6b   :  { %3321 = vmatprep.subr.bf16.mxu1 %v3653_v49  ;;  %v3693_v49 = vld [vmem:[#allocation2 + $0x4c0] sm:$0xff]  }
  0x6c   :  { %v3741_v45 = vld [vmem:[#allocation2 + $0x5e0] sm:$0xff]  }
  0x6d   :  { %3300 = vmatpush3.bf16.msra.mxu0 %v3654_v50  ;;  %v3694_v50 = vld [vmem:[#allocation2 + $0x400] sm:$0xff]  }
  0x6e   :  { %3322 = vmatpush3.bf16.msra.mxu1 %v3655_v51  ;;  %3301 = vmatprep.subr.bf16.mxu0 %v3656_v52  ;;  %v3695_v51 = vld [vmem:[#allocation2 + $0x480] sm:$0xff]   ;;  %v3696_v52 = vld [vmem:[#allocation2 + $0x448] sm:$0xff]  }
  0x6f   :  { %3323 = vmatprep.subr.bf16.mxu1 %v3657_v53  ;;  %v3697_v53 = vld [vmem:[#allocation2 + $0x4c8] sm:$0xff]   ;;  %v3742_v46 = vld [vmem:[#allocation2 + $0x520] sm:$0xff]  }
  0x71   :  { %3302 = vmatpush3.bf16.msra.mxu0 %v3658_v54  ;;  %v3698_v54 = vld [vmem:[#allocation2 + $0x408] sm:$0xff]  }
  0x72   :  { %3324 = vmatpush3.bf16.msra.mxu1 %v3659_v55  ;;  %3331 = vmatprep.subr.bf16.mxu0 %v3660_v4  ;;  %v3699_v55 = vld [vmem:[#allocation2 + $0x488] sm:$0xff]  }
  0x73   :  { %3353 = vmatprep.subr.bf16.mxu1 %v3661_v5  ;;  %v3712_v4 = vld [vmem:[#allocation2 + $0x468] sm:$0xff]  }
  0x74   :  { %2339 = vmatmul.mubr.bf16.vlgmr.msra.gmra.mrb[8].mxu0 %v107_v2  ;;  %v3710_v2 = vld [vmem:[#allocation2 + $0x420] sm:$0xff]   ;;  %v3713_v5 = vld [vmem:[#allocation2 + $0x4e8] sm:$0xff]  }
  0x75   :  { %2380 = vmatmul.mubr.bf16.vlgmr.msra.gmra.mrb[8].mxu1 %v109_v3  ;;  %3332 = vmatpush3.bf16.msra.mxu0 %v3662_v6  ;;  %v3711_v3 = vld [vmem:[#allocation2 + $0x4a0] sm:$0xff]   ;;  %v3714_v6 = vld [vmem:[#allocation2 + $0x428] sm:$0xff]  }
  0x76   :  { %3354 = vmatpush3.bf16.msra.mxu1 %v3663_v7  ;;  %3333 = vmatprep.subr.bf16.mxu0 %v3664_v8  ;;  %v3715_v7 = vld [vmem:[#allocation2 + $0x4a8] sm:$0xff]   ;;  %v3716_v8 = vld [vmem:[#allocation2 + $0x470] sm:$0xff]  }
  0x77   :  { %3355 = vmatprep.subr.bf16.mxu1 %v3665_v9  ;;  %2420 = vmatprep.mubr.bf16.mxu0 %v112_v39  ;;  %v3717_v9 = vld [vmem:[#allocation2 + $0x4f0] sm:$0xff]  }
  0x78   :  { %2461 = vmatprep.mubr.bf16.mxu1 %v114_v43  ;;  %v3735_v39 = vld [vmem:[#allocation2 + $0x590] sm:$0xff]   ;;  %v3739_v43 = vld [vmem:[#allocation2 + $0x598] sm:$0xff]  }
  0x79   :  { %3334 = vmatpush3.bf16.msra.mxu0 %v3666_v10  ;;  %v3718_v10 = vld [vmem:[#allocation2 + $0x430] sm:$0xff]  }
  0x7a   :  { %3356 = vmatpush3.bf16.msra.mxu1 %v3667_v11  ;;  %3335 = vmatprep.subr.bf16.mxu0 %v3668_v12  ;;  %v3719_v11 = vld [vmem:[#allocation2 + $0x4b0] sm:$0xff]   ;;  %v3720_v12 = vld [vmem:[#allocation2 + $0x478] sm:$0xff]  }
  0x7b   :  { %3357 = vmatprep.subr.bf16.mxu1 %v3669_v13  ;;  %v3721_v13 = vld [vmem:[#allocation2 + $0x4f8] sm:$0xff]  }
  0x7d   :  { %3336 = vmatpush3.bf16.msra.mxu0 %v3670_v14  ;;  %v3722_v14 = vld [vmem:[#allocation2 + $0x438] sm:$0xff]  }
  0x7e   :  { %3358 = vmatpush3.bf16.msra.mxu1 %v3671_v15  ;;  %3337 = vmatprep.subr.bf16.mxu0 %v3672_v16  ;;  %v3723_v15 = vld [vmem:[#allocation2 + $0x4b8] sm:$0xff]   ;;  %v52_v16 = vld [vmem:[%s4140_s0 + $0x88] sm:$0xff] }
  0x7f   :  { %3359 = vmatprep.subr.bf16.mxu1 %v3673_v17  ;;  %v84_v17 = vld [vmem:[%s4140_s0 + $0x188] sm:$0xff] }
  0x81   :  { %3338 = vmatpush3.bf16.msra.mxu0 %v3674_v18  ;;  %v54_v18 = vld [vmem:[%s4140_s0 + $0x98] sm:$0xff] }
  0x82   :  { %3360 = vmatpush3.bf16.msra.mxu1 %v3675_v19  ;;  %3339 = vmatprep.subr.bf16.mxu0 %v3676_v20  ;;  %v86_v19 = vld [vmem:[%s4140_s0 + $0x198] sm:$0xff]  ;;  %v116_v20 = vpack.c.bf16 %v84_v17, %v52_v16  ;;  %v3764_v16 = vld [vmem:[#allocation2 + $0x650] sm:$0xff]  }
  0x83   :  { %3361 = vmatprep.subr.bf16.mxu1 %v3677_v21  ;;  %v118_v21 = vpack.c.bf16 %v86_v19, %v54_v18  ;;  %v3765_v17 = vld [vmem:[#allocation2 + $0x6d0] sm:$0xff]  }
  0x84   :  { %v3766_v18 = vld [vmem:[#allocation2 + $0x610] sm:$0xff]  }
  0x85   :  { %3340 = vmatpush3.bf16.msra.mxu0 %v3678_v22  ;;  %v51_v22 = vld [vmem:[%s4140_s0 + $0x80] sm:$0xff]  ;;  %v3767_v19 = vld [vmem:[#allocation2 + $0x690] sm:$0xff]  }
  0x86   :  { %3362 = vmatpush3.bf16.msra.mxu1 %v3679_v23  ;;  %3341 = vmatprep.subr.bf16.mxu0 %v3680_v24  ;;  %v83_v23 = vld [vmem:[%s4140_s0 + $0x180] sm:$0xff]  ;;  %v53_v24 = vld [vmem:[%s4140_s0 + $0x90] sm:$0xff] }
  0x87   :  { %3363 = vmatprep.subr.bf16.mxu1 %v3681_v25  ;;  %v115_v25 = vpack.c.bf16 %v83_v23, %v51_v22  ;;  %v3770_v22 = vld [vmem:[#allocation2 + $0x618] sm:$0xff]  }
  0x88   :  { %v3771_v23 = vld [vmem:[#allocation2 + $0x698] sm:$0xff]  }
  0x89   :  { %3342 = vmatpush3.bf16.msra.mxu0 %v3682_v26  ;;  %v85_v26 = vld [vmem:[%s4140_s0 + $0x190] sm:$0xff] }
  0x8a   :  { %3364 = vmatpush3.bf16.msra.mxu1 %v3683_v27  ;;  %3343 = vmatprep.subr.bf16.mxu0 %v3684_v28  ;;  %v117_v27 = vpack.c.bf16 %v85_v26, %v53_v24  ;;  %v3724_v28 = vld [vmem:[#allocation2 + $0x540] sm:$0xff]  }
  0x8b   :  { %3365 = vmatprep.subr.bf16.mxu1 %v3685_v29  ;;  %v3725_v29 = vld [vmem:[#allocation2 + $0x5c0] sm:$0xff]  }
  0x8c   :  { %v3772_v24 = vld [vmem:[#allocation2 + $0x660] sm:$0xff]  }
  0x8d   :  { %3344 = vmatpush3.bf16.msra.mxu0 %v3686_v30  ;;  %v3726_v30 = vld [vmem:[#allocation2 + $0x500] sm:$0xff]  }
  0x8e   :  { %3366 = vmatpush3.bf16.msra.mxu1 %v3687_v31  ;;  %3345 = vmatprep.subr.bf16.mxu0 %v3688_v32  ;;  %v3727_v31 = vld [vmem:[#allocation2 + $0x580] sm:$0xff]   ;;  %v3728_v32 = vld [vmem:[#allocation2 + $0x548] sm:$0xff]  }
  0x8f   :  { %3367 = vmatprep.subr.bf16.mxu1 %v3689_v33  ;;  %v3729_v33 = vld [vmem:[#allocation2 + $0x5c8] sm:$0xff]   ;;  %v3774_v26 = vld [vmem:[#allocation2 + $0x620] sm:$0xff]  }
  0x91   :  { %3346 = vmatpush3.bf16.msra.mxu0 %v3690_v34  ;;  %v3730_v34 = vld [vmem:[#allocation2 + $0x508] sm:$0xff]  }
  0x92   :  { %3368 = vmatpush3.bf16.msra.mxu1 %v3691_v35  ;;  %3375 = vmatprep.subr.bf16.mxu0 %v3692_v48  ;;  %v3731_v35 = vld [vmem:[#allocation2 + $0x588] sm:$0xff]  }
  0x93   :  { %3397 = vmatprep.subr.bf16.mxu1 %v3693_v49  ;;  %v3744_v48 = vld [vmem:[#allocation2 + $0x568] sm:$0xff]  }
  0x94   :  { %2421 = vmatmul.mubr.bf16.vlgmr.msra.gmra.mrb[12].mxu0 %v111_v44  ;;  %v3740_v44 = vld [vmem:[#allocation2 + $0x560] sm:$0xff]   ;;  %v3745_v49 = vld [vmem:[#allocation2 + $0x5e8] sm:$0xff]  }
  0x95   :  { %2462 = vmatmul.mubr.bf16.vlgmr.msra.gmra.mrb[12].mxu1 %v113_v47  ;;  %3376 = vmatpush3.bf16.msra.mxu0 %v3694_v50  ;;  %v3743_v47 = vld [vmem:[#allocation2 + $0x5a0] sm:$0xff]   ;;  %v3746_v50 = vld [vmem:[#allocation2 + $0x528] sm:$0xff]  }
  0x96   :  { %3398 = vmatpush3.bf16.msra.mxu1 %v3695_v51  ;;  %3377 = vmatprep.subr.bf16.mxu0 %v3696_v52  ;;  %v3747_v51 = vld [vmem:[#allocation2 + $0x5a8] sm:$0xff]   ;;  %v3748_v52 = vld [vmem:[#allocation2 + $0x570] sm:$0xff]  }
  0x97   :  { %3399 = vmatprep.subr.bf16.mxu1 %v3697_v53  ;;  %2502 = vmatprep.mubr.bf16.mxu0 %v116_v20  ;;  %v3749_v53 = vld [vmem:[#allocation2 + $0x5f0] sm:$0xff]   ;;  %v3768_v20 = vld [vmem:[#allocation2 + $0x658] sm:$0xff]  }
  0x98   :  { %2543 = vmatprep.mubr.bf16.mxu1 %v118_v21  ;;  %v3769_v21 = vld [vmem:[#allocation2 + $0x6d8] sm:$0xff]  }
  0x99   :  { %3378 = vmatpush3.bf16.msra.mxu0 %v3698_v54  ;;  %v3750_v54 = vld [vmem:[#allocation2 + $0x530] sm:$0xff]  }
  0x9a   :  { %3400 = vmatpush3.bf16.msra.mxu1 %v3699_v55  ;;  %3379 = vmatprep.subr.bf16.mxu0 %v3700_v56  ;;  %v3751_v55 = vld [vmem:[#allocation2 + $0x5b0] sm:$0xff]   ;;  %v3752_v56 = vld [vmem:[#allocation2 + $0x578] sm:$0xff]  }
  0x9b   :  { %3401 = vmatprep.subr.bf16.mxu1 %v3701_v57  ;;  %v3753_v57 = vld [vmem:[#allocation2 + $0x5f8] sm:$0xff]  }
  0x9d   :  { %3380 = vmatpush3.bf16.msra.mxu0 %v3702_v58  ;;  %v3754_v58 = vld [vmem:[#allocation2 + $0x538] sm:$0xff]  }
  0x9e   :  { %3402 = vmatpush3.bf16.msra.mxu1 %v3703_v59  ;;  %3381 = vmatprep.subr.bf16.mxu0 %v3704_v60  ;;  %v3755_v59 = vld [vmem:[#allocation2 + $0x5b8] sm:$0xff]   ;;  %v56_v60 = vld [vmem:[%s4140_s0 + $0xa8] sm:$0xff] }
  0x9f   :  { %3403 = vmatprep.subr.bf16.mxu1 %v3705_v61  ;;  %v88_v61 = vld [vmem:[%s4140_s0 + $0x1a8] sm:$0xff] }
  0xa1   :  { %3382 = vmatpush3.bf16.msra.mxu0 %v3706_v62  ;;  %v120_v62 = vpack.c.bf16 %v88_v61, %v56_v60  ;;  %v3794_v61 = vld [vmem:[#allocation2 + $0x750] sm:$0xff]  }
  0xa2   :  { %3404 = vmatpush3.bf16.msra.mxu1 %v3707_v63  ;;  %3383 = vmatprep.subr.bf16.mxu0 %v3708_v0  ;;  %v58_v63 = vld [vmem:[%s4140_s0 + $0xb8] sm:$0xff] }
  0xa3   :  { %3405 = vmatprep.subr.bf16.mxu1 %v3709_v1  ;;  %v90_v0 = vld [vmem:[%s4140_s0 + $0x1b8] sm:$0xff]  ;;  %v55_v1 = vld [vmem:[%s4140_s0 + $0xa0] sm:$0xff] }
  0xa5   :  { %3384 = vmatpush3.bf16.msra.mxu0 %v3710_v2  ;;  %v122_v2 = vpack.c.bf16 %v90_v0, %v58_v63  ;;  %v3795_v63 = vld [vmem:[#allocation2 + $0x710] sm:$0xff]  }
  0xa6   :  { %3406 = vmatpush3.bf16.msra.mxu1 %v3711_v3  ;;  %3385 = vmatprep.subr.bf16.mxu0 %v3712_v4  ;;  %v87_v3 = vld [vmem:[%s4140_s0 + $0x1a0] sm:$0xff]  ;;  %v57_v4 = vld [vmem:[%s4140_s0 + $0xb0] sm:$0xff] }
  0xa7   :  { %3407 = vmatprep.subr.bf16.mxu1 %v3713_v5  ;;  %v89_v5 = vld [vmem:[%s4140_s0 + $0x1b0] sm:$0xff] }
  0xa9   :  { %3386 = vmatpush3.bf16.msra.mxu0 %v3714_v6  ;;  %v119_v6 = vpack.c.bf16 %v87_v3, %v55_v1 }
  0xaa   :  { %3408 = vmatpush3.bf16.msra.mxu1 %v3715_v7  ;;  %3387 = vmatprep.subr.bf16.mxu0 %v3716_v8  ;;  %v121_v7 = vpack.c.bf16 %v89_v5, %v57_v4  ;;  %v3756_v8 = vld [vmem:[#allocation2 + $0x640] sm:$0xff]   ;;  %v3797_v5 = vld [vmem:[#allocation2 + $0x758] sm:$0xff]  }
  0xab   :  { %3409 = vmatprep.subr.bf16.mxu1 %v3717_v9  ;;  %v3757_v9 = vld [vmem:[#allocation2 + $0x6c0] sm:$0xff]  }
  0xad   :  { %3388 = vmatpush3.bf16.msra.mxu0 %v3718_v10  ;;  %v3758_v10 = vld [vmem:[#allocation2 + $0x600] sm:$0xff]  }
  0xae   :  { %3410 = vmatpush3.bf16.msra.mxu1 %v3719_v11  ;;  %3389 = vmatprep.subr.bf16.mxu0 %v3720_v12  ;;  %v3759_v11 = vld [vmem:[#allocation2 + $0x680] sm:$0xff]   ;;  %v3760_v12 = vld [vmem:[#allocation2 + $0x648] sm:$0xff]  }
  0xaf   :  { %3411 = vmatprep.subr.bf16.mxu1 %v3721_v13  ;;  %v3761_v13 = vld [vmem:[#allocation2 + $0x6c8] sm:$0xff]  }
  0xb1   :  { %3390 = vmatpush3.bf16.msra.mxu0 %v3722_v14  ;;  %v3762_v14 = vld [vmem:[#allocation2 + $0x608] sm:$0xff]  }
  0xb2   :  { %3412 = vmatpush3.bf16.msra.mxu1 %v3723_v15  ;;  %3419 = vmatprep.subr.bf16.mxu0 %v3724_v28  ;;  %v3763_v15 = vld [vmem:[#allocation2 + $0x688] sm:$0xff]  }
  0xb3   :  { %3441 = vmatprep.subr.bf16.mxu1 %v3725_v29  ;;  %v3776_v28 = vld [vmem:[#allocation2 + $0x668] sm:$0xff]  }
  0xb4   :  { %2503 = vmatmul.mubr.bf16.vlgmr.msra.gmra.mrb[16].mxu0 %v115_v25  ;;  %v3773_v25 = vld [vmem:[#allocation2 + $0x6e0] sm:$0xff]   ;;  %v3777_v29 = vld [vmem:[#allocation2 + $0x6e8] sm:$0xff]  }
  0xb5   :  { %2544 = vmatmul.mubr.bf16.vlgmr.msra.gmra.mrb[16].mxu1 %v117_v27  ;;  %3420 = vmatpush3.bf16.msra.mxu0 %v3726_v30  ;;  %v3775_v27 = vld [vmem:[#allocation2 + $0x6a0] sm:$0xff]   ;;  %v3778_v30 = vld [vmem:[#allocation2 + $0x628] sm:$0xff]  }
  0xb6   :  { %3442 = vmatpush3.bf16.msra.mxu1 %v3727_v31  ;;  %3421 = vmatprep.subr.bf16.mxu0 %v3728_v32  ;;  %v3779_v31 = vld [vmem:[#allocation2 + $0x6a8] sm:$0xff]   ;;  %v3780_v32 = vld [vmem:[#allocation2 + $0x670] sm:$0xff]  }
  0xb7   :  { %3443 = vmatprep.subr.bf16.mxu1 %v3729_v33  ;;  %2584 = vmatprep.mubr.bf16.mxu0 %v120_v62  ;;  %v3781_v33 = vld [vmem:[#allocation2 + $0x6f0] sm:$0xff]  }
  0xb8   :  { %2625 = vmatprep.mubr.bf16.mxu1 %v122_v2  ;;  %v3796_v2 = vld [vmem:[#allocation2 + $0x790] sm:$0xff]  }
  0xb9   :  { %3422 = vmatpush3.bf16.msra.mxu0 %v3730_v34  ;;  %v3782_v34 = vld [vmem:[#allocation2 + $0x630] sm:$0xff]  }
  0xba   :  { %3444 = vmatpush3.bf16.msra.mxu1 %v3731_v35  ;;  %3423 = vmatprep.subr.bf16.mxu0 %v3732_v36  ;;  %v3783_v35 = vld [vmem:[#allocation2 + $0x6b0] sm:$0xff]   ;;  %v3784_v36 = vld [vmem:[#allocation2 + $0x678] sm:$0xff]  }
  0xbb   :  { %3445 = vmatprep.subr.bf16.mxu1 %v3733_v37  ;;  %v3785_v37 = vld [vmem:[#allocation2 + $0x6f8] sm:$0xff]  }
  0xbd   :  { %3424 = vmatpush3.bf16.msra.mxu0 %v3734_v38  ;;  %v3786_v38 = vld [vmem:[#allocation2 + $0x638] sm:$0xff]  }
  0xbe   :  { %3446 = vmatpush3.bf16.msra.mxu1 %v3735_v39  ;;  %3425 = vmatprep.subr.bf16.mxu0 %v3736_v40  ;;  %v3787_v39 = vld [vmem:[#allocation2 + $0x6b8] sm:$0xff]   ;;  %v60_v40 = vld [vmem:[%s4140_s0 + $0xc8] sm:$0xff] }
  0xbf   :  { %3447 = vmatprep.subr.bf16.mxu1 %v3737_v41  ;;  %v92_v41 = vld [vmem:[%s4140_s0 + $0x1c8] sm:$0xff] }
  0xc1   :  { %3426 = vmatpush3.bf16.msra.mxu0 %v3738_v42  ;;  %v62_v42 = vld [vmem:[%s4140_s0 + $0xd8] sm:$0xff] }
  0xc2   :  { %3448 = vmatpush3.bf16.msra.mxu1 %v3739_v43  ;;  %3427 = vmatprep.subr.bf16.mxu0 %v3740_v44  ;;  %v124_v43 = vpack.c.bf16 %v92_v41, %v60_v40  ;;  %v94_v44 = vld [vmem:[%s4140_s0 + $0x1d8] sm:$0xff]  ;;  %v3813_v40 = vld [vmem:[#allocation2 + $0x7c8] sm:$0xff]   ;;  %v65_v41 = vld [vmem:[%s4140_s0 + $0xf0] sm:$0xff] }
  0xc3   :  { %3449 = vmatprep.subr.bf16.mxu1 %v3741_v45  ;;  %v59_v45 = vld [vmem:[%s4140_s0 + $0xc0] sm:$0xff] }
  0xc5   :  { %3428 = vmatpush3.bf16.msra.mxu0 %v3742_v46  ;;  %v91_v46 = vld [vmem:[%s4140_s0 + $0x1c0] sm:$0xff] }
  0xc6   :  { %3450 = vmatpush3.bf16.msra.mxu1 %v3743_v47  ;;  %3429 = vmatprep.subr.bf16.mxu0 %v3744_v48  ;;  %v126_v47 = vpack.c.bf16 %v94_v44, %v62_v42  ;;  %v123_v48 = vpack.c.bf16 %v91_v46, %v59_v45  ;;  %v97_v42 = vld [vmem:[%s4140_s0 + $0x1f0] sm:$0xff] }
  0xc7   :  { %3451 = vmatprep.subr.bf16.mxu1 %v3745_v49  ;;  %v61_v49 = vld [vmem:[%s4140_s0 + $0xd0] sm:$0xff] }
  0xc9   :  { %3430 = vmatpush3.bf16.msra.mxu0 %v3746_v50  ;;  %v93_v50 = vld [vmem:[%s4140_s0 + $0x1d0] sm:$0xff] }
  0xca   :  { %3452 = vmatpush3.bf16.msra.mxu1 %v3747_v51  ;;  %3431 = vmatprep.subr.bf16.mxu0 %v3748_v52  ;;  %v3857_v51 = vmov 0   ;;  %v125_v52 = vpack.c.bf16 %v93_v50, %v61_v49 }
  0xcb   :  { %3453 = vmatprep.subr.bf16.mxu1 %v3749_v53  ;;  %v3788_v53 = vld [vmem:[#allocation2 + $0x740] sm:$0xff]  }
  0xcd   :  { %3432 = vmatpush3.bf16.msra.mxu0 %v3750_v54  ;;  %v3789_v54 = vld [vmem:[#allocation2 + $0x700] sm:$0xff]  }
  0xce   :  { %3454 = vmatpush3.bf16.msra.mxu1 %v3751_v55  ;;  %3433 = vmatprep.subr.bf16.mxu0 %v3752_v56  ;;  %v3790_v55 = vld [vmem:[#allocation2 + $0x780] sm:$0xff]   ;;  %v3791_v56 = vld [vmem:[#allocation2 + $0x748] sm:$0xff]  }
  0xcf   :  { %3455 = vmatprep.subr.bf16.mxu1 %v3753_v57  ;;  %v3792_v57 = vld [vmem:[#allocation2 + $0x708] sm:$0xff]  }
  0xd1   :  { %3434 = vmatpush3.bf16.msra.mxu0 %v3754_v58 }
  0xd2   :  { %3456 = vmatpush3.bf16.msra.mxu1 %v3755_v59  ;;  %3463 = vmatprep.subr.bf16.mxu0 %v3756_v8  ;;  %v3793_v59 = vld [vmem:[#allocation2 + $0x788] sm:$0xff]  }
  0xd3   :  { %3485 = vmatprep.subr.bf16.mxu1 %v3757_v9  ;;  %v3799_v9 = vld [vmem:[#allocation2 + $0x798] sm:$0xff]  }
  0xd4   :  { %2585 = vmatmul.mubr.bf16.vlgmr.msra.gmra.mrb[20].mxu0 %v119_v6 }
  0xd5   :  { %2626 = vmatmul.mubr.bf16.vlgmr.msra.gmra.mrb[20].mxu1 %v121_v7  ;;  %3464 = vmatpush3.bf16.msra.mxu0 %v3758_v10  ;;  %v3798_v7 = vld [vmem:[#allocation2 + $0x718] sm:$0xff]  }
  0xd6   :  { %3486 = vmatpush3.bf16.msra.mxu1 %v3759_v11  ;;  %3465 = vmatprep.subr.bf16.mxu0 %v3760_v12  ;;  %v3800_v12 = vld [vmem:[#allocation2 + $0x760] sm:$0xff]  }
  0xd7   :  { %3487 = vmatprep.subr.bf16.mxu1 %v3761_v13  ;;  %2666 = vmatprep.mubr.bf16.mxu0 %v124_v43  ;;  %v129_v43 = vpack.c.bf16 %v97_v42, %v65_v41 }
  0xd8   :  { %2707 = vmatprep.mubr.bf16.mxu1 %v126_v47 }
  0xd9   :  { %3466 = vmatpush3.bf16.msra.mxu0 %v3762_v14  ;;  %v3801_v14 = vld [vmem:[#allocation2 + $0x720] sm:$0xff]  }
  0xda   :  { %3488 = vmatpush3.bf16.msra.mxu1 %v3763_v15  ;;  %3467 = vmatprep.subr.bf16.mxu0 %v3764_v16  ;;  %v2938_v15 = vld [vmem:[%s4142_s2] ss:$0 sm:$0xff] }
  0xdb   :  { %3489 = vmatprep.subr.bf16.mxu1 %v3765_v17  ;;  %v3802_v16 = vld [vmem:[#allocation2 + $0x7a0] sm:$0xff]  }
  0xdd   :  { %3468 = vmatpush3.bf16.msra.mxu0 %v3766_v18 }
  0xde   :  { %3490 = vmatpush3.bf16.msra.mxu1 %v3767_v19  ;;  %3469 = vmatprep.subr.bf16.mxu0 %v3768_v20  ;;  %v3803_v19 = vld [vmem:[#allocation2 + $0x768] sm:$0xff]  }
  0xdf   :  { %3491 = vmatprep.subr.bf16.mxu1 %v3769_v21 }
  0xe1   :  { %3470 = vmatpush3.bf16.msra.mxu0 %v3770_v22  ;;  %v3804_v22 = vld [vmem:[#allocation2 + $0x728] sm:$0xff]  }
  0xe2   :  { %3492 = vmatpush3.bf16.msra.mxu1 %v3771_v23  ;;  %3471 = vmatprep.subr.bf16.mxu0 %v3772_v24  ;;  %v3805_v23 = vld [vmem:[#allocation2 + $0x7a8] sm:$0xff]   ;;  %v3806_v24 = vld [vmem:[#allocation2 + $0x770] sm:$0xff]  }
  0xe3   :  { %3493 = vmatprep.subr.bf16.mxu1 %v3773_v25  ;;  %v3807_v25 = vld [vmem:[#allocation2 + $0x730] sm:$0xff]  }
  0xe5   :  { %3472 = vmatpush3.bf16.msra.mxu0 %v3774_v26  ;;  %v3808_v26 = vld [vmem:[#allocation2 + $0x7b0] sm:$0xff]  }
  0xe6   :  { %3494 = vmatpush3.bf16.msra.mxu1 %v3775_v27  ;;  %3473 = vmatprep.subr.bf16.mxu0 %v3776_v28  ;;  %v3809_v27 = vld [vmem:[#allocation2 + $0x778] sm:$0xff]   ;;  %v64_v28 = vld [vmem:[%s4140_s0 + $0xe8] sm:$0xff] }
  0xe7   :  { %3495 = vmatprep.subr.bf16.mxu1 %v3777_v29  ;;  %v96_v29 = vld [vmem:[%s4140_s0 + $0x1e8] sm:$0xff] }
  0xe9   :  { %3474 = vmatpush3.bf16.msra.mxu0 %v3778_v30  ;;  %v3810_v30 = vld [vmem:[#allocation2 + $0x738] sm:$0xff]  }
  0xea   :  { %3496 = vmatpush3.bf16.msra.mxu1 %v3779_v31  ;;  %3475 = vmatprep.subr.bf16.mxu0 %v3780_v32  ;;  %v128_v31 = vpack.c.bf16 %v96_v29, %v64_v28  ;;  %v63_v32 = vld [vmem:[%s4140_s0 + $0xe0] sm:$0xff] }
  0xeb   :  { %3497 = vmatprep.subr.bf16.mxu1 %v3781_v33  ;;  %v95_v33 = vld [vmem:[%s4140_s0 + $0x1e0] sm:$0xff] }
  0xed   :  { %3476 = vmatpush3.bf16.msra.mxu0 %v3782_v34  ;;  %v66_v34 = vld [vmem:[%s4140_s0 + $0xf8] sm:$0xff] }
  0xee   :  { %3498 = vmatpush3.bf16.msra.mxu1 %v3783_v35  ;;  %3477 = vmatprep.subr.bf16.mxu0 %v3784_v36  ;;  %v98_v35 = vld [vmem:[%s4140_s0 + $0x1f8] sm:$0xff] }
  0xef   :  { %3499 = vmatprep.subr.bf16.mxu1 %v3785_v37  ;;  %v3811_v36 = vld [vmem:[#allocation2 + $0x7b8] sm:$0xff]   ;;  %v130_v37 = vpack.c.bf16 %v98_v35, %v66_v34  ;;  %v3819_v34 = vld [vmem:[%s4143_s3 + $0x28] sm:$0xff]   ;;  %v3820_v35 = vld [vmem:[%s4143_s3 + $0x30] sm:$0xff]  }
  0xf1   :  { %3478 = vmatpush3.bf16.msra.mxu0 %v3786_v38  ;;  %v127_v38 = vpack.c.bf16 %v95_v33, %v63_v32  ;;  %v3818_v33 = vld [vmem:[%s4143_s3 + $0x20] sm:$0xff]  }
  0xf2   :  { %3500 = vmatpush3.bf16.msra.mxu1 %v3787_v39  ;;  %3507 = vmatprep.subr.bf16.mxu0 %v3788_v53  ;;  %v3812_v39 = vld [vmem:[#allocation2 + $0x7c0] sm:$0xff]  }
  0xf3   :  { %2757 = vmatprep.subr.bf16.mxu1 %v3857_v51 }
  0xf4   :  { %2667 = vmatmul.mubr.bf16.vlgmr.msra.gmra.mrb[24].mxu0 %v123_v48 }
  0xf5   :  { %2708 = vmatmul.mubr.bf16.vlgmr.msra.gmra.mrb[24].mxu1 %v125_v52  ;;  %3508 = vmatpush3.bf16.msra.mxu0 %v3789_v54 }
  0xf6   :  { %2758 = vmatpush1.bf16.msra.mxu1 %v3790_v55  ;;  %3509 = vmatprep.subr.bf16.mxu0 %v3791_v56 }
  0xf7   :  { %2759 = vmatprep.subr.bf16.mxu1 %v3857_v51  ;;  %2748 = vmatprep.mubr.bf16.mxu0 %v128_v31 }
  0xf8   :  { %3189 = vmatprep.mubr.msk.bf16.mxu1 %vm2138_vm0, %v130_v37 }
  0xf9   :  { %3510 = vmatpush3.bf16.msra.mxu0 %v3792_v57 }
  0xfa   :  { %2760 = vmatpush1.bf16.msra.mxu1 %v3793_v59  ;;  %3511 = vmatprep.subr.bf16.mxu0 %v3794_v61 }
  0xfb   :  { %2761 = vmatprep.subr.bf16.mxu1 %v3857_v51 }
  0xfd   :  { %3512 = vmatpush3.bf16.msra.mxu0 %v3795_v63 }
  0xfe   :  { %2762 = vmatpush1.bf16.msra.mxu1 %v3796_v2  ;;  %3513 = vmatprep.subr.bf16.mxu0 %v3797_v5 }
  0xff   :  { %2763 = vmatprep.subr.bf16.mxu1 %v3857_v51 }
 0x101   :  { %3514 = vmatpush3.bf16.msra.mxu0 %v3798_v7 }
 0x102   :  { %2764 = vmatpush1.bf16.msra.mxu1 %v3799_v9  ;;  %3515 = vmatprep.subr.bf16.mxu0 %v3800_v12  ;;  %v3814_v12 = vld [vmem:[%s4143_s3] sm:$0xff]  }
 0x103   :  { %2765 = vmatprep.subr.bf16.mxu1 %v3857_v51 }
 0x105   :  { %3516 = vmatpush3.bf16.msra.mxu0 %v3801_v14  ;;  %v3815_v14 = vld [vmem:[%s4143_s3 + $0x8] sm:$0xff]  }
 0x106   :  { %2766 = vmatpush1.bf16.msra.mxu1 %v3802_v16  ;;  %3517 = vmatprep.subr.bf16.mxu0 %v3803_v19  ;;  %v3817_v16 = vld [vmem:[%s4143_s3 + $0x18] sm:$0xff]  }
 0x107   :  { %v3215_v58 = vpop.f32.mrb[0].mxu0  ;;  %2767 = vmatprep.subr.bf16.mxu1 %v3857_v51 }
 0x108   :  { %v3237_v60 = vpop.f32.mrb[0].mxu1  ;;  %v3216_v62 = vpop.f32.mrb[1].mxu0 }
 0x109   :  { %v3217_v0 = vadd.f32 %v3216_v62, %v3215_v58  ;;  %v3238_v1 = vpop.f32.mrb[1].mxu1  ;;  %v3218_v4 = vpop.f32.mrb[2].mxu0  ;;  %3518 = vmatpush3.bf16.msra.mxu0 %v3804_v22 }
 0x10a   :  { %v3239_v3 = vadd.f32 %v3238_v1, %v3237_v60  ;;  %v3240_v6 = vpop.f32.mrb[2].mxu1  ;;  %v3219_v8 = vpop.f32.mrb[3].mxu0  ;;  %2768 = vmatpush1.bf16.msra.mxu1 %v3805_v23  ;;  %3519 = vmatprep.subr.bf16.mxu0 %v3806_v24 }
 0x10b   :  { %v3220_v10 = vadd.f32 %v3219_v8, %v3218_v4  ;;  %v3241_v11 = vpop.f32.mrb[3].mxu1  ;;  %v2177_v17 = vadd.f32 %v3217_v0, %v2938_v15  ;;  %2769 = vmatprep.subr.bf16.mxu1 %v3857_v51 }
 0x10c   :  { %v3242_v13 = vadd.f32 %v3241_v11, %v3240_v6 }
 0x10d   :  { %v2180_v18 = vadd.f32 %v3220_v10, %v2938_v15  ;;  %v2218_v20 = vadd.f32 %v3239_v3, %v2177_v17  ;;  %3520 = vmatpush3.bf16.msra.mxu0 %v3807_v25  ;;  %v3816_v15 = vld [vmem:[%s4143_s3 + $0x10] sm:$0xff]  }
 0x10e   :  { %2770 = vmatpush1.bf16.msra.mxu1 %v3808_v26  ;;  %3521 = vmatprep.subr.bf16.mxu0 %v3809_v27 }
 0x10f   :  { %v2221_v21 = vadd.f32 %v3242_v13, %v2180_v18  ;;  %2771 = vmatprep.subr.bf16.mxu1 %v3857_v51  ;;  %v3858_v13 = vmov 0.0  }
 0x111   :  { %3522 = vmatpush3.bf16.msra.mxu0 %v3810_v30 }
 0x112   :  { %2772 = vmatpush1.bf16.msra.mxu1 %v3811_v36  ;;  %3538 = vmatprep.subr.bf16.mxu0 %v3858_v13  ;;  %v3821_v36 = vld [vmem:[%s4143_s3 + $0x38] sm:$0xff]  }
 0x113   :  { %2773 = vmatprep.subr.bf16.mxu1 %v3857_v51 }
 0x114   :  { %2749 = vmatmul.mubr.bf16.vlgmr.msra.gmra.mrb[28].mxu0 %v127_v38 }
 0x115   :  { %3539 = vmatpush3.bf16.msra.mxu0 %v3814_v12  ;;  %3554 = vmatprep.mubr.msk.bf16.mxu0 %vm3859_vm1, %v3858_v13 }
 0x116   :  { %2774 = vmatpush1.bf16.msra.mxu1 %v3812_v39  ;;  %3540 = vmatprep.subr.bf16.mxu0 %v3858_v13 }
 0x117   :  { %2775 = vmatprep.subr.bf16.mxu1 %v3857_v51 }
 0x119   :  { %3541 = vmatpush3.bf16.msra.mxu0 %v3815_v14 }
 0x11a   :  { %2776 = vmatpush1.bf16.msra.mxu1 %v3813_v40  ;;  %3542 = vmatprep.subr.bf16.mxu0 %v3858_v13 }
 0x11d   :  { %2790 = vmatmul.mubr.bf16.vlgmr.msra.gmra.mrb[28].mxu1 %v129_v43  ;;  %3543 = vmatpush3.bf16.msra.mxu0 %v3816_v15 }
 0x11e   :  { %3544 = vmatprep.subr.bf16.mxu0 %v3858_v13 }
 0x121   :  { %3545 = vmatpush3.bf16.msra.mxu0 %v3817_v16 }
 0x122   :  { %3546 = vmatprep.subr.bf16.mxu0 %v3858_v13 }
 0x125   :  { %3547 = vmatpush3.bf16.msra.mxu0 %v3818_v33 }
 0x126   :  { %3548 = vmatprep.subr.bf16.mxu0 %v3858_v13 }
 0x127   :  { %v3259_v44 = vpop.f32.mrb[4].mxu0 }
 0x128   :  { %v3281_v45 = vpop.f32.mrb[4].mxu1  ;;  %v3260_v46 = vpop.f32.mrb[5].mxu0 }
 0x129   :  { %v3261_v47 = vadd.f32 %v3260_v46, %v3259_v44  ;;  %v3282_v48 = vpop.f32.mrb[5].mxu1  ;;  %v3262_v49 = vpop.f32.mrb[6].mxu0  ;;  %3549 = vmatpush3.bf16.msra.mxu0 %v3819_v34 }
 0x12a   :  { %v3283_v50 = vadd.f32 %v3282_v48, %v3281_v45  ;;  %v3284_v52 = vpop.f32.mrb[6].mxu1  ;;  %v3263_v53 = vpop.f32.mrb[7].mxu0  ;;  %3550 = vmatprep.subr.bf16.mxu0 %v3858_v13 }
 0x12b   :  { %v2259_v54 = vadd.f32 %v3261_v47, %v2218_v20  ;;  %v3264_v55 = vadd.f32 %v3263_v53, %v3262_v49  ;;  %v3285_v56 = vpop.f32.mrb[7].mxu1 }
 0x12c   :  { %v3286_v57 = vadd.f32 %v3285_v56, %v3284_v52 }
 0x12d   :  { %v2300_v58 = vadd.f32 %v3283_v50, %v2259_v54  ;;  %v2262_v59 = vadd.f32 %v3264_v55, %v2221_v21  ;;  %3551 = vmatpush3.bf16.msra.mxu0 %v3820_v35 }
 0x12e   :  { %3552 = vmatprep.subr.bf16.mxu0 %v3858_v13 }
 0x12f   :  { %v2303_v60 = vadd.f32 %v3286_v57, %v2262_v59 }
 0x131   :  { %3553 = vmatpush3.bf16.msra.mxu0 %v3821_v36 }
 0x147   :  { %v3303_v51 = vpop.f32.mrb[8].mxu0 }
 0x148   :  { %v3325_v61 = vpop.f32.mrb[8].mxu1  ;;  %v3304_v62 = vpop.f32.mrb[9].mxu0 }
 0x149   :  { %v3326_v63 = vpop.f32.mrb[9].mxu1  ;;  %v3305_v0 = vadd.f32 %v3304_v62, %v3303_v51  ;;  %v3306_v2 = vpop.f32.mrb[10].mxu0 }
 0x14a   :  { %v3327_v1 = vadd.f32 %v3326_v63, %v3325_v61  ;;  %v3328_v3 = vpop.f32.mrb[10].mxu1  ;;  %v3307_v4 = vpop.f32.mrb[11].mxu0 }
 0x14b   :  { %v3329_v5 = vpop.f32.mrb[11].mxu1  ;;  %v2341_v6 = vadd.f32 %v3305_v0, %v2300_v58  ;;  %v3308_v7 = vadd.f32 %v3307_v4, %v3306_v2 }
 0x14c   :  { %v3330_v8 = vadd.f32 %v3329_v5, %v3328_v3 }
 0x14d   :  { %v2382_v9 = vadd.f32 %v3327_v1, %v2341_v6  ;;  %v2344_v10 = vadd.f32 %v3308_v7, %v2303_v60 }
 0x14f   :  { %v2385_v11 = vadd.f32 %v3330_v8, %v2344_v10 }
 0x167   :  { %v3347_v17 = vpop.f32.mrb[12].mxu0 }
 0x168   :  { %v3369_v18 = vpop.f32.mrb[12].mxu1  ;;  %v3348_v19 = vpop.f32.mrb[13].mxu0 }
 0x169   :  { %v3349_v20 = vadd.f32 %v3348_v19, %v3347_v17  ;;  %v3370_v21 = vpop.f32.mrb[13].mxu1  ;;  %v3350_v22 = vpop.f32.mrb[14].mxu0 }
 0x16a   :  { %v3371_v23 = vadd.f32 %v3370_v21, %v3369_v18  ;;  %v3372_v24 = vpop.f32.mrb[14].mxu1  ;;  %v3351_v25 = vpop.f32.mrb[15].mxu0 }
 0x16b   :  { %v2423_v26 = vadd.f32 %v3349_v20, %v2382_v9  ;;  %v3352_v27 = vadd.f32 %v3351_v25, %v3350_v22  ;;  %v3373_v28 = vpop.f32.mrb[15].mxu1 }
 0x16c   :  { %v3374_v29 = vadd.f32 %v3373_v28, %v3372_v24 }
 0x16d   :  { %v2464_v30 = vadd.f32 %v3371_v23, %v2423_v26  ;;  %v2426_v31 = vadd.f32 %v3352_v27, %v2385_v11 }
 0x16f   :  { %v2467_v32 = vadd.f32 %v3374_v29, %v2426_v31 }
 0x187   :  { %v3391_v37 = vpop.f32.mrb[16].mxu0 }
 0x188   :  { %v3413_v38 = vpop.f32.mrb[16].mxu1  ;;  %v3392_v39 = vpop.f32.mrb[17].mxu0 }
 0x189   :  { %v3393_v40 = vadd.f32 %v3392_v39, %v3391_v37  ;;  %v3414_v41 = vpop.f32.mrb[17].mxu1  ;;  %v3394_v42 = vpop.f32.mrb[18].mxu0 }
 0x18a   :  { %v3415_v43 = vadd.f32 %v3414_v41, %v3413_v38  ;;  %v3416_v44 = vpop.f32.mrb[18].mxu1  ;;  %v3395_v45 = vpop.f32.mrb[19].mxu0  ;;  %v3190_v38 = vld [vmem:[%s4144_s4] ss:$0 sm:$0xff] }
 0x18b   :  { %v2505_v46 = vadd.f32 %v3393_v40, %v2464_v30  ;;  %v3396_v47 = vadd.f32 %v3395_v45, %v3394_v42  ;;  %v3417_v48 = vpop.f32.mrb[19].mxu1 }
 0x18c   :  { %v3418_v49 = vadd.f32 %v3417_v48, %v3416_v44 }
 0x18d   :  { %v2546_v50 = vadd.f32 %v3415_v43, %v2505_v46  ;;  %v2508_v52 = vadd.f32 %v3396_v47, %v2467_v32 }
 0x18f   :  { %v2549_v53 = vadd.f32 %v3418_v49, %v2508_v52 }
 0x1a7   :  { %v3435_v54 = vpop.f32.mrb[20].mxu0 }
 0x1a8   :  { %v3457_v55 = vpop.f32.mrb[20].mxu1  ;;  %v3436_v56 = vpop.f32.mrb[21].mxu0 }
 0x1a9   :  { %v3458_v57 = vpop.f32.mrb[21].mxu1  ;;  %v3437_v58 = vadd.f32 %v3436_v56, %v3435_v54  ;;  %v3438_v60 = vpop.f32.mrb[22].mxu0 }
 0x1aa   :  { %v3459_v59 = vadd.f32 %v3458_v57, %v3457_v55  ;;  %v3460_v51 = vpop.f32.mrb[22].mxu1  ;;  %v3439_v61 = vpop.f32.mrb[23].mxu0 }
 0x1ab   :  { %v3461_v62 = vpop.f32.mrb[23].mxu1  ;;  %v2587_v63 = vadd.f32 %v3437_v58, %v2546_v50  ;;  %v3440_v0 = vadd.f32 %v3439_v61, %v3438_v60 }
 0x1ac   :  { %v3462_v1 = vadd.f32 %v3461_v62, %v3460_v51 }
 0x1ad   :  { %v2628_v2 = vadd.f32 %v3459_v59, %v2587_v63  ;;  %v2590_v3 = vadd.f32 %v3440_v0, %v2549_v53 }
 0x1af   :  { %v2631_v4 = vadd.f32 %v3462_v1, %v2590_v3 }
 0x1c7   :  { %v3479_v5 = vpop.f32.mrb[24].mxu0 }
 0x1c8   :  { %v3501_v6 = vpop.f32.mrb[24].mxu1  ;;  %v3480_v7 = vpop.f32.mrb[25].mxu0 }
 0x1c9   :  { %v3481_v8 = vadd.f32 %v3480_v7, %v3479_v5  ;;  %v3502_v9 = vpop.f32.mrb[25].mxu1  ;;  %v3482_v10 = vpop.f32.mrb[26].mxu0 }
 0x1ca   :  { %v3503_v11 = vadd.f32 %v3502_v9, %v3501_v6  ;;  %v3504_v12 = vpop.f32.mrb[26].mxu1  ;;  %v3483_v13 = vpop.f32.mrb[27].mxu0 }
 0x1cb   :  { %v2669_v14 = vadd.f32 %v3481_v8, %v2628_v2  ;;  %v3484_v15 = vadd.f32 %v3483_v13, %v3482_v10  ;;  %v3505_v16 = vpop.f32.mrb[27].mxu1 }
 0x1cc   :  { %v3506_v17 = vadd.f32 %v3505_v16, %v3504_v12 }
 0x1cd   :  { %v2710_v18 = vadd.f32 %v3503_v11, %v2669_v14  ;;  %v2672_v19 = vadd.f32 %v3484_v15, %v2631_v4 }
 0x1cf   :  { %v2713_v20 = vadd.f32 %v3506_v17, %v2672_v19 }
 0x1e7   :  { %v3523_v21 = vpop.f32.mrb[28].mxu0 }
 0x1e8   :  { %v3524_v22 = vpop.f32.mrb[29].mxu0 }
 0x1e9   :  { %v3525_v23 = vadd.f32 %v3524_v22, %v3523_v21  ;;  %v3526_v24 = vpop.f32.mrb[30].mxu0 }
 0x1ea   :  { %v3527_v25 = vpop.f32.mrb[31].mxu0 }
 0x1eb   :  { %v3528_v26 = vadd.f32 %v3527_v25, %v3526_v24  ;;  %v2751_v27 = vadd.f32 %v3525_v23, %v2710_v18 }
 0x1ed   :  { %v2754_v28 = vadd.f32 %v3528_v26, %v2713_v20 }
 0x1f0   :  { %v2791_v29 = vpop.f32.mrb[28].mxu1 }
 0x1f1   :  { %v2792_v30 = vadd.f32 %v2791_v29, %v2751_v27  ;;  %v2793_v31 = vpop.f32.mrb[29].mxu1 }
 0x1f2   :  { %v2794_v32 = vpop.f32.mrb[30].mxu1 }
 0x1f3   :  { %v2795_v33 = vadd.f32 %v2794_v32, %v2754_v28  ;;  %v2796_v34 = vpop.f32.mrb[31].mxu1  ;;  %v2798_v35 = vmax.f32 %v2792_v30, 0.0 }
 0x1f5   :  { %v2799_v36 = vmax.f32 %v2795_v33, 0.0 }
 0x1f7   :  { %v2800_v37 = vpack.c.bf16 %v2799_v36, %v2798_v35 }
 0x1f9   :  { %3555 = vmatmul.mubr.bf16.vlgmr.msra.gmra.mrb[32].mxu0 %v2800_v37 }
 0x2cc   :  { %v2906_v39 = vpop.f32.mrb[32].mxu0 }
 0x2cd   :  { %v2907_v40 = vadd.f32 %v3190_v38, %v2906_v39  ;;  %v3556_v41 = vpop.f32.mrb[33].mxu0 }
 0x2ce   :  { %v2909_v42 = vpop.f32.mrb[34].mxu0 }
 0x2cf   :  { %2913 = vmax.xlane.f32.xlu0 %v2907_v40  ;;  %v3557_v43 = vpop.f32.mrb[35].mxu0  ;;  %v2910_v44 = vadd.f32 %v3190_v38, %v2909_v42 }
 0x2d3   :  { %2915 = vmax.xlane.f32.xlu0 %v2910_v44 }
 0x35c   :  { %v2914_v45 = vpop.xlane.xlu0 %2913 }
 0x35d   :  { %v2917_v46 = vsub.f32 %v2907_v40, %v2914_v45 }
 0x35f   :  { %v2919_v47 = vmul.f32 1.442695, %v2917_v46 }
 0x360   :  { %v2916_v48 = vpop.xlane.xlu0 %2915 }
 0x361   :  { %3822 = vpow2.f32 %v2919_v47  ;;  %v2918_v49 = vsub.f32 %v2910_v44, %v2916_v48 }
 0x363   :  { %v2921_v50 = vmul.f32 1.442695, %v2918_v49 }
 0x365   :  { %3824 = vpow2.f32 %v2921_v50 }
 0x36b   :  { %v3823_v52 = vpop.eup %3822 }
 0x36c   :  { %2923 = vadd.xlane.f32.xlu1 %v3823_v52 }
 0x36f   :  { %v3825_v53 = vpop.eup %3824 }
 0x370   :  { %2925 = vadd.xlane.f32.xlu1 %v3825_v53 }
 0x3f9   :  { %v2924_v54 = vpop.xlane.xlu1 %2923 }
 0x3fa   :  { %3826 = vrcp.f32 %v2924_v54 }
 0x3fd   :  { %v2926_v55 = vpop.xlane.xlu1 %2925 }
 0x3fe   :  { %3828 = vrcp.f32 %v2926_v55 }
 0x404   :  { %v3827_v56 = vpop.eup %3826 }
 0x405   :  { %v2929_v57 = vmul.f32 %v3827_v56, %v3823_v52 }
 0x407   :  { %2931 = vst [vmem:[%s4145_s5] sm:$0xff] %v2929_v57 }
 0x408   :  { %v3829_v58 = vpop.eup %3828 }
 0x409   :  { %v2930_v59 = vmul.f32 %v3829_v58, %v3825_v53 }
 0x40b   :  { %2932 = vst [vmem:[%s4145_s5 + $0x8] sm:$0xff] %v2930_v59 }
 0x40c   :  { %2937 = vsyncpa [#allocation3], 1 }

</bundles_post_ra>
